<compile_context>
chip_gen: v7x
topology: tpu7x:2x2x1
jax: 0.10.0
libtpu: 0.0.40
codegen_flags: <defaults>
</compile_context>

<pallas_src>
import functools

import jax
import jax.numpy as jnp
from jax.experimental import pallas as pl
from jax.experimental.pallas import tpu as pltpu

NEG_SLOPE = 0.01            # nn.LeakyReLU() default negative_slope
IN_DIM = 6
IN_PAD = 8                  # input width padded to a full sublane group
H1, H2, OUT_DIM = 32, 16, 1
H2_PAD = 32                 # keep layer-2 width at 32 (zero-padded) -> no :16 slices
W3_ROWS = 8                 # W3 padded to 8 output rows; row 0 is the real output
LANE = 128


def _lrelu(x):
    return jnp.where(x >= 0, x, NEG_SLOPE * x)


def mlp_kernel(x_ref, w1_ref, w2_ref, w3_ref, b_ref, out_ref):
    # x_ref: (8, tb) f32      w1: (32, 8) bf16   w2: (32, 32) bf16
    # w3:    (8, 32) bf16     b:  (3, 32, 1) f32  out_ref: (1, tb) f32
    x = x_ref[...].astype(jnp.bfloat16)                       # bf16 MXU feed

    h1 = jnp.dot(w1_ref[...], x, preferred_element_type=jnp.float32)
    h1 = _lrelu(h1 + b_ref[0])                                # (32, tb), f32

    h2 = jnp.dot(w2_ref[...], h1.astype(jnp.bfloat16),
                 preferred_element_type=jnp.float32)
    h2 = _lrelu(h2 + b_ref[1])                                # (32, tb); rows 16:32 stay 0

    o = jnp.dot(w3_ref[...], h2.astype(jnp.bfloat16),
                preferred_element_type=jnp.float32)           # (8, tb); row 0 is real
    b3 = b_ref[2][0:1, :]                                     # (1, 1)
    out_ref[...] = (o[0:1, :] + b3).astype(out_ref.dtype)     # lane-dense (1, tb) store


def pack_params(params):
    """One-time packing at init/load time: native (out,in) orientation, zero-padded."""
    w1 = jnp.zeros((H1, IN_PAD), jnp.float32).at[:, :IN_DIM].set(params["w1"])
    w2 = jnp.zeros((H2_PAD, H1), jnp.float32).at[:H2, :].set(params["w2"])
    w3 = jnp.zeros((W3_ROWS, H2_PAD), jnp.float32).at[0, :H2].set(params["w3"][0])
    b = jnp.zeros((3, H1, 1), jnp.float32)
    b = b.at[0, :, 0].set(params["b1"])
    b = b.at[1, :H2, 0].set(params["b2"])      # rows 16:32 must stay exactly 0
    b = b.at[2, 0, 0].set(params["b3"][0])
    return (w1.astype(jnp.bfloat16), w2.astype(jnp.bfloat16),
            w3.astype(jnp.bfloat16), b)


def _round_up(n, m):
    return ((n + m - 1) // m) * m


@functools.partial(jax.jit, static_argnames=("block_b",))
def mlp_forward(x, w1, w2, w3, b, *, block_b=32768):
    """x: (B, 6) float32 -> (B, 1) float32."""
    B, in_dim = x.shape
    assert in_dim == IN_DIM
    block_b = _round_up(block_b, LANE)
    tb = min(block_b, _round_up(B, LANE))
    # Force >=2 grid steps when the batch allows it so the "parallel" axis can
    # shard across both v7x TensorCores (no-op on single-TC v5e/v6e).
    if _round_up(B, tb) == tb and tb >= 2 * LANE:
        tb = _round_up(tb // 2, LANE)
    Bp = _round_up(B, tb)

    # One wrapper-side transpose: (B, 6) -> lane-dense (8, Bp), features on sublanes.
    x_t = jnp.pad(x, ((0, Bp - B), (0, IN_PAD - IN_DIM))).T

    flops = 2 * Bp * (H1 * IN_PAD + H2_PAD * H1 + W3_ROWS * H2_PAD)
    bytes_accessed = (Bp * (IN_PAD * 4 + 4)
                      + 2 * (H1 * IN_PAD + H2_PAD * H1 + W3_ROWS * H2_PAD)
                      + 4 * 3 * H1)

    out = pl.pallas_call(
        mlp_kernel,
        out_shape=jax.ShapeDtypeStruct((1, Bp), x.dtype),
        grid_spec=pltpu.PrefetchScalarGridSpec(
            num_scalar_prefetch=0,
            grid=(Bp // tb,),
            in_specs=[
                pl.BlockSpec((IN_PAD, tb), lambda i: (0, i)),      # x: streamed per tile
                pl.BlockSpec((H1, IN_PAD), lambda i: (0, 0)),      # params: VMEM-resident
                pl.BlockSpec((H2_PAD, H1), lambda i: (0, 0)),
                pl.BlockSpec((W3_ROWS, H2_PAD), lambda i: (0, 0)),
                pl.BlockSpec((3, H1, 1), lambda i: (0, 0, 0)),
            ],
            out_specs=pl.BlockSpec((1, tb), lambda i: (0, i)),     # lane-dense output slab
        ),
        compiler_params=pltpu.CompilerParams(
            dimension_semantics=("parallel",)),
        cost_estimate=pl.CostEstimate(
            flops=flops, transcendentals=0, bytes_accessed=bytes_accessed),
    )(x_t, w1, w2, w3, b)
    return out[0, :B].reshape(B, OUT_DIM)


def _reference(x, params):
    h = x @ params["w1"].T + params["b1"]
    h = jnp.where(h >= 0, h, NEG_SLOPE * h)
    h = h @ params["w2"].T + params["b2"]
    h = jnp.where(h >= 0, h, NEG_SLOPE * h)
    return h @ params["w3"].T + params["b3"]


def init_params(key):
    ks = jax.random.split(key, 3)

    def lin(k, out_d, in_d):
        bound = 1.0 / jnp.sqrt(in_d)   # PyTorch nn.Linear default init
        kw, kb = jax.random.split(k)
        w = jax.random.uniform(kw, (out_d, in_d), jnp.float32, -bound, bound)
        b = jax.random.uniform(kb, (out_d,), jnp.float32, -bound, bound)
        return w, b

    w1, b1 = lin(ks[0], H1, IN_DIM)
    w2, b2 = lin(ks[1], H2, H1)
    w3, b3 = lin(ks[2], OUT_DIM, H2)
    return dict(w1=w1, b1=b1, w2=w2, b2=b2, w3=w3, b3=b3)


if __name__ == "__main__":
    key = jax.random.PRNGKey(0)
    kx, kp = jax.random.split(key)

    B = 300                                   # small; exercises batch padding + 3 grid steps
    x = jax.random.normal(kx, (B, IN_DIM), jnp.float32)
    params = init_params(kp)
    w1, w2, w3, b = pack_params(params)

    out = mlp_forward(x, w1, w2, w3, b, block_b=128)
    out = jax.block_until_ready(out)

    ref = _reference(x, params)
    assert out.shape == (B, OUT_DIM) and out.dtype == jnp.float32
    # bf16 MXU operands -> compare against the f32 reference with a loosened tolerance.
    assert jnp.allclose(out, ref, atol=5e-2, rtol=5e-2), "mismatch vs pure-JAX reference"
    print("KERNEL_OK")
</pallas_src>

<mosaic_0001>
module attributes {stable_mosaic.version = 11 : i64} {
  func.func @mlp_kernel(%arg0: i32, %arg1: memref<8x128xf32, #tpu.memory_space<vmem>>, %arg2: memref<32x8xbf16, #tpu.memory_space<vmem>>, %arg3: memref<32x32xbf16, #tpu.memory_space<vmem>>, %arg4: memref<8x32xbf16, #tpu.memory_space<vmem>>, %arg5: memref<3x32x1xf32, #tpu.memory_space<vmem>>, %arg6: memref<1x128xf32, #tpu.memory_space<vmem>>) attributes {dimension_semantics = [#tpu.dimension_semantics<parallel>], iteration_bounds = array<i64: 3>, scalar_prefetch = 0 : i64, scratch_operands = 0 : i64, tpu.core_type = #tpu.core_type<tc>, window_params = [{transform_indices = @transform_0, window_bounds = array<i64: 8, 128>}, {pipeline_mode = #tpu.pipeline_mode<synchronous>, transform_indices = @transform_1, window_bounds = array<i64: 32, 8>}, {pipeline_mode = #tpu.pipeline_mode<synchronous>, transform_indices = @transform_2, window_bounds = array<i64: 32, 32>}, {pipeline_mode = #tpu.pipeline_mode<synchronous>, transform_indices = @transform_3, window_bounds = array<i64: 8, 32>}, {pipeline_mode = #tpu.pipeline_mode<synchronous>, transform_indices = @transform_4, window_bounds = array<i64: 3, 32, 1>}, {transform_indices = @transform_5, window_bounds = array<i64: 1, 128>}]} {
    %c0 = arith.constant 0 : index
    %c0_0 = arith.constant 0 : index
    %0 = vector.load %arg1[%c0, %c0_0] : memref<8x128xf32, #tpu.memory_space<vmem>>, vector<8x128xf32>
    %1 = arith.truncf %0 : vector<8x128xf32> to vector<8x128xbf16>
    %c0_1 = arith.constant 0 : index
    %c0_2 = arith.constant 0 : index
    %2 = vector.load %arg2[%c0_1, %c0_2] : memref<32x8xbf16, #tpu.memory_space<vmem>>, vector<32x8xbf16>
    %cst = arith.constant dense<0.000000e+00> : vector<32x128xf32>
    %3 = tpu.matmul %2, %1, %cst {dimension_numbers = #tpu.dot_dimension_numbers<[1], [0], [0], [1], [0, 0, 1, 1], [], []>} : vector<32x8xbf16>, vector<8x128xbf16>, vector<32x128xf32> -> vector<32x128xf32>
    %c0_3 = arith.constant 0 : index
    %c0_4 = arith.constant 0 : index
    %c0_5 = arith.constant 0 : index
    %4 = vector.load %arg5[%c0_3, %c0_4, %c0_5] : memref<3x32x1xf32, #tpu.memory_space<vmem>>, vector<1x32x1xf32>
    %5 = vector.shape_cast %4 : vector<1x32x1xf32> to vector<32x1xf32>
    %6 = vector.broadcast %5 : vector<32x1xf32> to vector<32x128xf32>
    %7 = arith.addf %3, %6 : vector<32x128xf32>
    %cst_6 = arith.constant 0.000000e+00 : f32
    %8 = vector.broadcast %cst_6 : f32 to vector<32x128xf32>
    %9 = arith.cmpf oge, %7, %8 : vector<32x128xf32>
    %cst_7 = arith.constant 0.00999999977 : f32
    %10 = vector.broadcast %cst_7 : f32 to vector<32x128xf32>
    %11 = arith.mulf %10, %7 : vector<32x128xf32>
    %12 = arith.select %9, %7, %11 : vector<32x128xi1>, vector<32x128xf32>
    %c0_8 = arith.constant 0 : index
    %c0_9 = arith.constant 0 : index
    %13 = vector.load %arg3[%c0_8, %c0_9] : memref<32x32xbf16, #tpu.memory_space<vmem>>, vector<32x32xbf16>
    %14 = arith.truncf %12 : vector<32x128xf32> to vector<32x128xbf16>
    %cst_10 = arith.constant dense<0.000000e+00> : vector<32x128xf32>
    %15 = tpu.matmul %13, %14, %cst_10 {dimension_numbers = #tpu.dot_dimension_numbers<[1], [0], [0], [1], [0, 0, 1, 1], [], []>} : vector<32x32xbf16>, vector<32x128xbf16>, vector<32x128xf32> -> vector<32x128xf32>
    %c1 = arith.constant 1 : index
    %c0_11 = arith.constant 0 : index
    %c0_12 = arith.constant 0 : index
    %16 = vector.load %arg5[%c1, %c0_11, %c0_12] : memref<3x32x1xf32, #tpu.memory_space<vmem>>, vector<1x32x1xf32>
    %17 = vector.shape_cast %16 : vector<1x32x1xf32> to vector<32x1xf32>
    %18 = vector.broadcast %17 : vector<32x1xf32> to vector<32x128xf32>
    %19 = arith.addf %15, %18 : vector<32x128xf32>
    %cst_13 = arith.constant 0.000000e+00 : f32
    %20 = vector.broadcast %cst_13 : f32 to vector<32x128xf32>
    %21 = arith.cmpf oge, %19, %20 : vector<32x128xf32>
    %cst_14 = arith.constant 0.00999999977 : f32
    %22 = vector.broadcast %cst_14 : f32 to vector<32x128xf32>
    %23 = arith.mulf %22, %19 : vector<32x128xf32>
    %24 = arith.select %21, %19, %23 : vector<32x128xi1>, vector<32x128xf32>
    %c0_15 = arith.constant 0 : index
    %c0_16 = arith.constant 0 : index
    %25 = vector.load %arg4[%c0_15, %c0_16] : memref<8x32xbf16, #tpu.memory_space<vmem>>, vector<8x32xbf16>
    %26 = arith.truncf %24 : vector<32x128xf32> to vector<32x128xbf16>
    %cst_17 = arith.constant dense<0.000000e+00> : vector<8x128xf32>
    %27 = tpu.matmul %25, %26, %cst_17 {dimension_numbers = #tpu.dot_dimension_numbers<[1], [0], [0], [1], [0, 0, 1, 1], [], []>} : vector<8x32xbf16>, vector<32x128xbf16>, vector<8x128xf32> -> vector<8x128xf32>
    %c2 = arith.constant 2 : index
    %c0_18 = arith.constant 0 : index
    %c0_19 = arith.constant 0 : index
    %28 = vector.load %arg5[%c2, %c0_18, %c0_19] : memref<3x32x1xf32, #tpu.memory_space<vmem>>, vector<1x32x1xf32>
    %29 = vector.shape_cast %28 : vector<1x32x1xf32> to vector<32x1xf32>
    %30 = vector.extract_strided_slice %29 {offsets = [0, 0], sizes = [1, 1], strides = [1, 1]} : vector<32x1xf32> to vector<1x1xf32>
    %31 = vector.extract_strided_slice %27 {offsets = [0, 0], sizes = [1, 128], strides = [1, 1]} : vector<8x128xf32> to vector<1x128xf32>
    %32 = vector.broadcast %30 : vector<1x1xf32> to vector<1x128xf32>
    %33 = arith.addf %31, %32 : vector<1x128xf32>
    %c0_20 = arith.constant 0 : index
    %c0_21 = arith.constant 0 : index
    %34 = vector.load %arg6[%c0_20, %c0_21] : memref<1x128xf32, #tpu.memory_space<vmem>>, vector<1x128xf32>
    tpu.vector_store %arg6[%c0_20, %c0_21], %33 {strides = array<i32>} : memref<1x128xf32, #tpu.memory_space<vmem>>, vector<1x128xf32>,
    return
  }
  func.func @transform_0(%arg0: i32) -> (i32, i32) {
    %c0_i32 = arith.constant 0 : i32
    %c0_i32_0 = arith.constant 0 : i32
    return %c0_i32, %arg0 : i32, i32
  }
  func.func @transform_1(%arg0: i32) -> (i32, i32) {
    %c0_i32 = arith.constant 0 : i32
    %c0_i32_0 = arith.constant 0 : i32
    %c0_i32_1 = arith.constant 0 : i32
    return %c0_i32, %c0_i32_0 : i32, i32
  }
  func.func @transform_2(%arg0: i32) -> (i32, i32) {
    %c0_i32 = arith.constant 0 : i32
    %c0_i32_0 = arith.constant 0 : i32
    %c0_i32_1 = arith.constant 0 : i32
    return %c0_i32, %c0_i32_0 : i32, i32
  }
  func.func @transform_3(%arg0: i32) -> (i32, i32) {
    %c0_i32 = arith.constant 0 : i32
    %c0_i32_0 = arith.constant 0 : i32
    %c0_i32_1 = arith.constant 0 : i32
    return %c0_i32, %c0_i32_0 : i32, i32
  }
  func.func @transform_4(%arg0: i32) -> (i32, i32, i32) {
    %c0_i32 = arith.constant 0 : i32
    %c0_i32_0 = arith.constant 0 : i32
    %c0_i32_1 = arith.constant 0 : i32
    %c0_i32_2 = arith.constant 0 : i32
    return %c0_i32, %c0_i32_0, %c0_i32_1 : i32, i32, i32
  }
  func.func @transform_5(%arg0: i32) -> (i32, i32) {
    %c0_i32 = arith.constant 0 : i32
    %c0_i32_0 = arith.constant 0 : i32
    return %c0_i32, %arg0 : i32, i32
  }
}

</mosaic_0001>

<bundles_post_ra>
// kernel: mlp_forward.1
= control target key start
LH: loop header
LB: loop body
LE: loop exit
PB: predicated region body
PF: predicated region fallthrough
CT: control target
= control target key end

     0   :  { %s655_s18 = smov 0   ;;  %s723_s0 = inlined_call_operand.vmem [shape: f32[8,384], index: 0, kind: input, shape index: {}]   ;;  %s724_s1 = inlined_call_operand.vmem [shape: bf16[32,8], index: 1, kind: input, shape index: {}]   ;;  %s725_s2 = inlined_call_operand.vmem [shape: bf16[32,32], index: 2, kind: input, shape index: {}]   ;;  %s726_s3 = inlined_call_operand.vmem [shape: bf16[8,32], index: 3, kind: input, shape index: {}]   ;;  %s727_s4 = inlined_call_operand.vmem [shape: f32[3,32,1], index: 4, kind: input, shape index: {}]   ;;  %s728_s5 = inlined_call_operand.vmem [shape: f32[1,384], index: 5, kind: output, shape index: {}]  }
   0x1 LB: > { %s542_s19 = sadd.s32 4294967295, %s620_s18   ;;  %p546_p0 = scmp.ge.s32.totalorder %s620_s18, 1  ;;  %s620_s18 = sphi %s655_s18, %s15_s18  }
   0x2   : > { %p186_p1 = scmp.lt.s32.totalorder %s620_s18, 4 }
   0x4   : > { %p187_p2 = pnand %p546_p0, %p186_p1 }
   0x5   : > { %p211_p3 = scmp.lt.s32.totalorder (!%p187_p2), %s542_s19, 2  ;;  %v610_v0 = vld [vmem:[%s724_s1] sm:$0xff] (!%p187_p2)   ;;  %vm259_vm0 = vcmask (!%p187_p2), 64512   ;;  %v622_v2 = vmov (!%p187_p2), 0   ;;  %v227_v3 = vld [vmem:[%s727_s4 + $0x10] sm:$0xff] (!%p187_p2)  ;;  %v226_v4 = vld [vmem:[%s727_s4 + $0x8] sm:$0xff] (!%p187_p2) }
   0x6   : > { %190 = sbr.rel (%p187_p2) target bundleno = 697 (0x2b9), region = 40  ;;  %v225_v1 = vld [vmem:[%s727_s4] sm:$0xff] (!%p187_p2)  ;;  %576 = vmatprep.mubr.msk.bf16.mxu0 (!%p187_p2), %vm259_vm0, %v610_v0  ;;  %608 = vset.pattern.permute.xlu0 (!%p187_p2), %v622_v2  ;;  %v228_v5 = vld [vmem:[%s727_s4 + $0x18] sm:$0xff] (!%p187_p2)  ;;  %vm266_vm1 = vcmask (!%p187_p2), 1043456   ;;  %v611_v9 = vld [vmem:[%s724_s1 + $0x8] sm:$0xff] (!%p187_p2)   ;;  %vm372_vm2 = vcmask (!%p187_p2), 261120  }
   0x7   : > { %231 = vperm.xlu0 (!%p187_p2), %608, %v225_v1   ;;  %609 = vset.pattern.permute.xlu1 (!%p187_p2), %v622_v2  ;;  %v552_v10 = vld [vmem:[%s727_s4 + $0x20] sm:$0xff] (!%p187_p2)  ;;  %v553_v11 = vld [vmem:[%s727_s4 + $0x28] sm:$0xff] (!%p187_p2)  ;;  %v554_v12 = vld [vmem:[%s727_s4 + $0x30] sm:$0xff] (!%p187_p2)  ;;  %v623_v39 = vmov (!%p187_p2), 0.0   ;;  %vm624_vm7 = vmmov (!%p187_p2), 0  }
   0x8   : > { %241 = vperm.xlu1 (!%p187_p2), %609, %v227_v3   ;;  %v555_v13 = vld [vmem:[%s727_s4 + $0x38] sm:$0xff] (!%p187_p2)  ;;  %v561_v14 = vld [vmem:[%s727_s4 + $0x40] sm:$0xff] (!%p187_p2)  ;;  %v613_v38 = vld [vmem:[%s725_s2 + $0x8] sm:$0xff] (!%p187_p2)  }
   0x9   : > { %v612_v15 = vld [vmem:[%s725_s2] sm:$0xff] (!%p187_p2)  }
   0xa   : > { %584 = vmatprep.mubr.msk.bf16.mxu1 (!%p187_p2), %vm372_vm2, %v612_v15  ;;  %v440_v62 = vld [vmem:[%s726_s3] sm:$0xf] (!%p187_p2) }
   0xb   : > { %236 = vperm.xlu0 (!%p187_p2), %608, %v226_v4  }
   0xc   : > { %246 = vperm.xlu1 (!%p187_p2), %609, %v228_v5  }
   0xd   : > { %s730_s19 = smov (!%p211_p3, %s542_s19), 2 }
   0xe   : > { %s547_s26 = sshll.u32 %s730_s19, 3 }
   0xf   : > { %s214_s6 = scalar_lea.vmem %s723_s0, %s547_s26  ;;  %344 = vperm.xlu0 %608, %v552_v10  }
  0x10   : > { %v219_v6 = vld [vmem:[%s214_s6] sm:$0xff]  ;;  %349 = vperm.xlu1 %609, %v553_v11   ;;  %s217_s6 = scalar_lea.vmem %s728_s5, %s730_s19 }
  0x11   : > { %v220_v7 = vpack.c.bf16 %v219_v6, %v219_v6 }
  0x13   : > { %596 = vmatprep.subr.msk.bf16.mxu0 %vm266_vm1, %v220_v7  ;;  %v268_v8 = vsel %vm266_vm1, %v220_v7, 0  ;;  %354 = vperm.xlu0 %608, %v554_v12  }
  0x14   : > { %575 = vmatpush3.bf16.msra.mxu0 %v268_v8  ;;  %359 = vperm.xlu1 %609, %v555_v13  }
  0x15   : > { %588 = vmatprep.subr.bf16.mxu0 %v623_v39 }
  0x17   : > { %577 = vmatmul.mubr.msk.bf16.vlgmr.msra.gmra.mrb[0].mxu0 %vm259_vm0, %v611_v9  ;;  %490 = vperm.xlu0 %608, %v561_v14  }
  0x18   : > { %592 = vmatprep.mubr.msk.bf16.mxu0 %vm624_vm7, %v623_v39 }
  0x86   : > { %v232_v17 = vpop.permute.xlu0 %231 }
  0x87   : > { %v242_v16 = vpop.permute.xlu1 %241 }
  0x8a   : > { %v237_v24 = vpop.permute.xlu0 %236 }
  0x8b   : > { %v247_v21 = vpop.permute.xlu1 %246 }
  0x8e   : > { %v345_v40 = vpop.permute.xlu0 %344 }
  0x8f   : > { %v350_v41 = vpop.permute.xlu1 %349 }
  0x92   : > { %v355_v42 = vpop.permute.xlu0 %354 }
  0x93   : > { %v360_v46 = vpop.permute.xlu1 %359 }
  0x96   : > { %v491_v63 = vpop.permute.xlu0 %490 }
  0xea   : > { %v578_v18 = vpop.f32.mrb[0].mxu0 }
  0xeb   : > { %v313_v19 = vadd.f32 %v578_v18, %v242_v16  ;;  %v304_v20 = vpop.f32.mrb[1].mxu0 }
  0xec   : > { %v305_v22 = vadd.f32 %v304_v20, %v232_v17  ;;  %v579_v23 = vpop.f32.mrb[2].mxu0 }
  0xed   : > { %v325_v25 = vmul.f32 0.01, %v313_v19  ;;  %v316_v26 = vadd.f32 %v579_v23, %v247_v21  ;;  %v307_v27 = vpop.f32.mrb[3].mxu0  ;;  %vm321_vm3 = vcmp.ge.f32.partialorder %v313_v19, 0.0 }
  0xee   : > { %v323_v28 = vmul.f32 0.01, %v305_v22  ;;  %v308_v29 = vadd.f32 %v307_v27, %v237_v24  ;;  %vm319_vm5 = vcmp.ge.f32.partialorder %v305_v22, 0.0 }
  0xef   : > { %vm322_vm4 = vcmp.ge.f32.partialorder %v316_v26, 0.0  ;;  %v326_v30 = vmul.f32 0.01, %v316_v26  ;;  %v329_v32 = vsel %vm321_vm3, %v313_v19, %v325_v25 }
  0xf0   : > { %v324_v31 = vmul.f32 0.01, %v308_v29  ;;  %vm320_vm6 = vcmp.ge.f32.partialorder %v308_v29, 0.0  ;;  %v327_v34 = vsel %vm319_vm5, %v305_v22, %v323_v28 }
  0xf1   : > { %v330_v33 = vsel %vm322_vm4, %v316_v26, %v326_v30 }
  0xf2   : > { %v328_v35 = vsel %vm320_vm6, %v308_v29, %v324_v31  ;;  %v336_v36 = vpack.c.bf16 %v330_v33, %v329_v32 }
  0xf3   : > { %v335_v37 = vpack.c.bf16 %v328_v35, %v327_v34 }
  0xf5   : > { %580 = vmatprep.subr.bf16.mxu1 %v335_v37 }
  0xf6   : > { %581 = vmatpush3.bf16.msra.mxu1 %v335_v37 }
  0xf7   : > { %582 = vmatprep.subr.bf16.mxu1 %v336_v36 }
  0xfa   : > { %583 = vmatpush3.bf16.msra.mxu1 %v336_v36 }
  0xfd   : > { %585 = vmatmul.mubr.msk.bf16.vlgmr.msra.gmra.mrb[0].mxu1 %vm372_vm2, %v613_v38 }
 0x1d0   : > { %v586_v43 = vpop.f32.mrb[0].mxu1 }
 0x1d1   : > { %v422_v44 = vadd.f32 %v586_v43, %v355_v42  ;;  %v413_v45 = vpop.f32.mrb[1].mxu1 }
 0x1d2   : > { %v414_v47 = vadd.f32 %v413_v45, %v345_v40  ;;  %v587_v48 = vpop.f32.mrb[2].mxu1 }
 0x1d3   : > { %v434_v49 = vmul.f32 0.01, %v422_v44  ;;  %v425_v50 = vadd.f32 %v587_v48, %v360_v46  ;;  %v416_v51 = vpop.f32.mrb[3].mxu1  ;;  %vm430_vm8 = vcmp.ge.f32.partialorder %v422_v44, 0.0 }
 0x1d4   : > { %v432_v52 = vmul.f32 0.01, %v414_v47  ;;  %v417_v53 = vadd.f32 %v416_v51, %v350_v41  ;;  %vm428_vm9 = vcmp.ge.f32.partialorder %v414_v47, 0.0 }
 0x1d5   : > { %vm431_vm10 = vcmp.ge.f32.partialorder %v425_v50, 0.0  ;;  %v435_v54 = vmul.f32 0.01, %v425_v50  ;;  %v438_v56 = vsel %vm430_vm8, %v422_v44, %v434_v49 }
 0x1d6   : > { %vm429_vm11 = vcmp.ge.f32.partialorder %v417_v53, 0.0  ;;  %v433_v55 = vmul.f32 0.01, %v417_v53  ;;  %v436_v58 = vsel %vm428_vm9, %v414_v47, %v432_v52 }
 0x1d7   : > { %v439_v57 = vsel %vm431_vm10, %v425_v50, %v435_v54 }
 0x1d8   : > { %v442_v59 = vpack.c.bf16 %v439_v57, %v438_v56  ;;  %v437_v60 = vsel %vm429_vm11, %v417_v53, %v433_v55 }
 0x1d9   : > { %v441_v61 = vpack.c.bf16 %v437_v60, %v436_v58 }
 0x1db   : > { %589 = vmatpush3.bf16.msra.mxu0 %v441_v61 }
 0x1dc   : > { %590 = vmatprep.subr.bf16.mxu0 %v623_v39 }
 0x1df   : > { %591 = vmatpush3.bf16.msra.mxu0 %v442_v59 }
 0x1e2   : > { %593 = vmatmul.mubr.msk.bf16.vlgmr.msra.gmra.mrb[4].mxu0 %vm372_vm2, %v440_v62 }
 0x2b5   : > { %v480_v0 = vpop.f32.mrb[4].mxu0 }
 0x2b6   : > { %v493_v1 = vadd.f32 %v491_v63, %v480_v0  ;;  %v594_v2 = vpop.f32.mrb[5].mxu0 }
 0x2b7   : > { %v483_v3 = vpop.f32.mrb[6].mxu0 }
 0x2b8   : > { %494 = vst [vmem:[%s217_s6] sm:$0x1] %v493_v1  ;;  %v595_v4 = vpop.f32.mrb[7].mxu0 }
 0x2b9 PF: > { %s15_s18 = sadd.s32 1, %s620_s18  }
 0x2ba   : > { %p12_p4 = scmp.ge.s32.totalorder %s15_s18, 5  }
 0x2bc   :  { %14 = sbr.rel (!%p12_p4) target bundleno = 1 (0x1), region = 72 }

</bundles_post_ra>
